<compile_context>
chip_gen: v7x
topology: tpu7x:2x2x1
jax: 0.10.0
libtpu: 0.0.40
codegen_flags: <defaults>
</compile_context>

<pallas_src>
import jax
import jax.numpy as jnp
import numpy as np
from jax.experimental import pallas as pl
from jax.experimental.pallas import tpu as pltpu

_LANE = 128  # TPU lane width (fast axis of a vreg / natural DMA chunk unit)


def _slow_indices(T: int, t_slow: int):
    """Trace-time indices matching torch.linspace(0, T-1, t_slow).long().

    Reproduces the float linspace followed by truncation toward zero (what
    `.long()` does) instead of an exact-integer formula, so the selected
    frames match PyTorch PackPathway for all practical (T, alpha).
    """
    if t_slow <= 0:
        return []
    if t_slow == 1:
        return [0]  # torch.linspace(start, end, 1) == [start]
    vals = np.linspace(0.0, float(T - 1), num=t_slow)
    return [int(v) for v in np.trunc(vals)]


def _plan_descriptors(idx_list, HW, *, min_inflight=8):
    """Static DMA plan: list of (src_t, dst_t, t_len, hw_off, hw_len).

    1) Coalesce runs of consecutive source indices into one descriptor
       (destination indices are consecutive by construction).
    2) If too few descriptors would be in flight, split each run along the
       lane-dense H*W axis into 128-aligned chunks to raise DMA concurrency.
    """
    runs = []  # each: [src_start, dst_start, t_len]
    for dst, src in enumerate(idx_list):
        if runs and src == runs[-1][0] + runs[-1][2]:
            runs[-1][2] += 1
        else:
            runs.append([src, dst, 1])
    if not runs:
        return []

    pieces = 1
    if len(runs) < min_inflight and HW >= 2 * _LANE:
        pieces = min(-(-min_inflight // len(runs)), HW // _LANE)

    descs = []
    for src0, dst0, t_len in runs:
        if pieces == 1:
            descs.append((src0, dst0, t_len, 0, HW))
        else:
            chunk = (HW // pieces) // _LANE * _LANE  # lane-aligned, >= 128
            off = 0
            for p in range(pieces):
                ln = chunk if p < pieces - 1 else HW - off
                descs.append((src0, dst0, t_len, off, ln))
                off += ln
    return descs


def _make_copy_kernel(shards):
    """Kernel issuing HBM->HBM DMAs for each shard's static descriptor list."""

    def _issue_and_drain(frames_hbm, slow_hbm, sem, descs):
        copies = []
        for (src_t, dst_t, t_len, hw0, hw_len) in descs:  # static Python loop
            cp = pltpu.make_async_copy(
                frames_hbm.at[:, pl.ds(src_t, t_len), pl.ds(hw0, hw_len)],
                slow_hbm.at[:, pl.ds(dst_t, t_len), pl.ds(hw0, hw_len)],
                sem.at[0],  # shared semaphore: drain completes in arrival order
            )
            cp.start()  # issue every DMA before the first wait
            copies.append(cp)
        for cp in copies:
            cp.wait()

    if len(shards) == 1:
        descs = shards[0]

        def kernel(frames_hbm, slow_hbm, sem):
            _issue_and_drain(frames_hbm, slow_hbm, sem, descs)

        return kernel

    def kernel(frames_hbm, slow_hbm, sem):
        core = pl.program_id(0)
        for s in range(len(shards)):

            @pl.when(core == s)
            def _(descs=shards[s]):
                _issue_and_drain(frames_hbm, slow_hbm, sem, descs)

    return kernel


def _default_num_shards():
    """2 on chips that expose >1 TensorCore per device (e.g. v7x), else 1."""
    try:
        dev = jax.devices()[0]
        for attr in ("num_cores", "core_count", "num_tensorcores"):
            n = getattr(dev, attr, None)
            if isinstance(n, int) and n >= 1:
                return min(int(n), 2)
    except Exception:
        pass
    return 1


def pack_pathway(frames: jnp.ndarray, alpha: int = 4, *,
                 num_shards=None, min_inflight_dmas: int = 8):
    """Returns [slow_pathway, fast_pathway], matching PackPathway.forward."""
    C, T, H, W = frames.shape
    t_slow = T // alpha
    fast = frames  # pure alias, no copy

    if t_slow == 0:
        # torch.index_select with an empty index -> empty slow pathway.
        slow = jnp.zeros((C, 0, H, W), dtype=frames.dtype)
        return [slow, fast]

    idx_list = _slow_indices(T, t_slow)
    HW = H * W
    # Free contiguous view for standard-layout input (keep frames time-minor
    # here; a wrapper-side transpose would copy the whole clip).
    frames_flat = frames.reshape(C, T, HW)

    descs = _plan_descriptors(idx_list, HW, min_inflight=min_inflight_dmas)
    if num_shards is None:
        num_shards = _default_num_shards()
    num_shards = max(1, min(int(num_shards), len(descs)))
    shards = [descs[s::num_shards] for s in range(num_shards)]

    kernel = _make_copy_kernel(shards)
    call_kwargs = dict(
        out_shape=jax.ShapeDtypeStruct((C, t_slow, HW), frames.dtype),
        in_specs=[pl.BlockSpec(memory_space=pl.ANY)],   # raw HBM ref, no auto-DMA
        out_specs=pl.BlockSpec(memory_space=pl.ANY),    # written directly by DMA
        scratch_shapes=[pltpu.SemaphoreType.DMA((1,))],  # one shared DMA sem
    )

    if num_shards == 1:
        # Gridless: single invocation issues all DMAs (best for v5e/v6e).
        slow_flat = pl.pallas_call(kernel, **call_kwargs)(frames_flat)
    else:
        # Shard DMA issue across TensorCores (v7x): each core gets a disjoint
        # subset of descriptors; on single-core chips this is a short serial
        # loop with no VMEM round trip.
        slow_flat = pl.pallas_call(
            kernel,
            grid=(num_shards,),
            compiler_params=pltpu.CompilerParams(
                dimension_semantics=("parallel",)),
            **call_kwargs,
        )(frames_flat)

    slow = slow_flat.reshape(C, t_slow, H, W)
    return [slow, fast]


if __name__ == "__main__":
    key = jax.random.PRNGKey(0)
    # Small shapes consistent with the module: C=4 channels, T=8 frames,
    # H=W=16 spatial.  alpha=4 -> slow pathway has T//alpha = 2 frames.
    C, T, H, W = 4, 8, 16, 16
    frames = jax.random.normal(key, (C, T, H, W), dtype=jnp.float32)

    def reference_slow(frames, alpha):
        t_slow = frames.shape[1] // alpha
        idx = _slow_indices(frames.shape[1], t_slow)
        if t_slow == 0:
            return jnp.zeros(frames.shape[:1] + (0,) + frames.shape[2:],
                             dtype=frames.dtype)
        return jnp.take(frames, jnp.asarray(idx, dtype=jnp.int32), axis=1)

    # Exercise: run coalescing (alpha=1), HW sub-splitting (small t_slow),
    # gridless and core-sharded variants, and the empty-slow edge case.
    for alpha in (1, 2, 4, 8):
        ref = reference_slow(frames, alpha)
        for shards in (1, 2):
            slow, fast = pack_pathway(frames, alpha=alpha, num_shards=shards)
            jax.block_until_ready(slow)
            jax.block_until_ready(fast)
            assert slow.shape == ref.shape, (alpha, shards, slow.shape)
            assert bool(jnp.array_equal(slow, ref)), (alpha, shards)
            assert bool(jnp.array_equal(fast, frames)), (alpha, shards)

    # Auto core-count detection path (defaults to gridless on 1-TC chips).
    slow, fast = pack_pathway(frames, alpha=4)
    jax.block_until_ready(slow)
    assert bool(jnp.array_equal(slow, reference_slow(frames, 4)))

    # Empty slow pathway (T // alpha == 0) never launches a kernel.
    slow, fast = pack_pathway(frames, alpha=16)
    assert slow.shape == (C, 0, H, W)
    assert bool(jnp.array_equal(fast, frames))

    print("KERNEL_OK")
</pallas_src>

<mosaic_0001>
module attributes {stable_mosaic.version = 11 : i64} {
  func.func @kernel(%arg0: memref<4x8x256xf32, #tpu.memory_space<any>>, %arg1: memref<4x8x256xf32, #tpu.memory_space<any>>, %arg2: memref<1x!tpu.dma_semaphore, #tpu.memory_space<semaphore_mem>>) attributes {dimension_semantics = [], scalar_prefetch = 0 : i64, scratch_operands = 1 : i64, tpu.core_type = #tpu.core_type<tc>} {
    %c0_i32 = arith.constant 0 : i32
    %c0_i32_0 = arith.constant 0 : i32
    %c0_i32_1 = arith.constant 0 : i32
    %c0_i32_2 = arith.constant 0 : i32
    %0 = tpu.memref_slice %arg0[%c0_i32_0, %c0_i32_1, %c0_i32_2] : memref<4x8x256xf32, #tpu.memory_space<any>> -> memref<4x8x128xf32, #tpu.memory_space<any>>
    %c0_i32_3 = arith.constant 0 : i32
    %c0_i32_4 = arith.constant 0 : i32
    %c0_i32_5 = arith.constant 0 : i32
    %1 = tpu.memref_slice %arg1[%c0_i32_3, %c0_i32_4, %c0_i32_5] : memref<4x8x256xf32, #tpu.memory_space<any>> -> memref<4x8x128xf32, #tpu.memory_space<any>>
    %2 = tpu.memref_slice %arg2[%c0_i32] : memref<1x!tpu.dma_semaphore, #tpu.memory_space<semaphore_mem>> -> memref<1x!tpu.dma_semaphore, #tpu.memory_space<semaphore_mem>>
    %3 = tpu.memref_squeeze %2 : memref<1x!tpu.dma_semaphore, #tpu.memory_space<semaphore_mem>> -> memref<!tpu.dma_semaphore, #tpu.memory_space<semaphore_mem>>
    tpu.enqueue_dma source(%0 : memref<4x8x128xf32, #tpu.memory_space<any>>) target(%1 : memref<4x8x128xf32, #tpu.memory_space<any>>) target_semaphore(%3 : memref<!tpu.dma_semaphore, #tpu.memory_space<semaphore_mem>>)
    %c0_i32_6 = arith.constant 0 : i32
    %c0_i32_7 = arith.constant 0 : i32
    %c0_i32_8 = arith.constant 0 : i32
    %c128_i32 = arith.constant 128 : i32
    %4 = tpu.memref_slice %arg0[%c0_i32_7, %c0_i32_8, %c128_i32] : memref<4x8x256xf32, #tpu.memory_space<any>> -> memref<4x8x128xf32, #tpu.memory_space<any>>
    %c0_i32_9 = arith.constant 0 : i32
    %c0_i32_10 = arith.constant 0 : i32
    %c128_i32_11 = arith.constant 128 : i32
    %5 = tpu.memref_slice %arg1[%c0_i32_9, %c0_i32_10, %c128_i32_11] : memref<4x8x256xf32, #tpu.memory_space<any>> -> memref<4x8x128xf32, #tpu.memory_space<any>>
    %6 = tpu.memref_slice %arg2[%c0_i32_6] : memref<1x!tpu.dma_semaphore, #tpu.memory_space<semaphore_mem>> -> memref<1x!tpu.dma_semaphore, #tpu.memory_space<semaphore_mem>>
    %7 = tpu.memref_squeeze %6 : memref<1x!tpu.dma_semaphore, #tpu.memory_space<semaphore_mem>> -> memref<!tpu.dma_semaphore, #tpu.memory_space<semaphore_mem>>
    tpu.enqueue_dma source(%4 : memref<4x8x128xf32, #tpu.memory_space<any>>) target(%5 : memref<4x8x128xf32, #tpu.memory_space<any>>) target_semaphore(%7 : memref<!tpu.dma_semaphore, #tpu.memory_space<semaphore_mem>>)
    %c0_i32_12 = arith.constant 0 : i32
    %c0_i32_13 = arith.constant 0 : i32
    %c0_i32_14 = arith.constant 0 : i32
    %c0_i32_15 = arith.constant 0 : i32
    %8 = tpu.memref_slice %arg0[%c0_i32_13, %c0_i32_14, %c0_i32_15] : memref<4x8x256xf32, #tpu.memory_space<any>> -> memref<4x8x128xf32, #tpu.memory_space<any>>
    %c0_i32_16 = arith.constant 0 : i32
    %c0_i32_17 = arith.constant 0 : i32
    %c0_i32_18 = arith.constant 0 : i32
    %9 = tpu.memref_slice %arg1[%c0_i32_16, %c0_i32_17, %c0_i32_18] : memref<4x8x256xf32, #tpu.memory_space<any>> -> memref<4x8x128xf32, #tpu.memory_space<any>>
    %10 = tpu.memref_slice %arg2[%c0_i32_12] : memref<1x!tpu.dma_semaphore, #tpu.memory_space<semaphore_mem>> -> memref<1x!tpu.dma_semaphore, #tpu.memory_space<semaphore_mem>>
    %11 = tpu.memref_squeeze %10 : memref<1x!tpu.dma_semaphore, #tpu.memory_space<semaphore_mem>> -> memref<!tpu.dma_semaphore, #tpu.memory_space<semaphore_mem>>
    tpu.wait_dma2 semaphore(%11 : memref<!tpu.dma_semaphore, #tpu.memory_space<semaphore_mem>>) src(%8 : memref<4x8x128xf32, #tpu.memory_space<any>>) dst(%9 : memref<4x8x128xf32, #tpu.memory_space<any>>)
    %c0_i32_19 = arith.constant 0 : i32
    %c0_i32_20 = arith.constant 0 : i32
    %c0_i32_21 = arith.constant 0 : i32
    %c128_i32_22 = arith.constant 128 : i32
    %12 = tpu.memref_slice %arg0[%c0_i32_20, %c0_i32_21, %c128_i32_22] : memref<4x8x256xf32, #tpu.memory_space<any>> -> memref<4x8x128xf32, #tpu.memory_space<any>>
    %c0_i32_23 = arith.constant 0 : i32
    %c0_i32_24 = arith.constant 0 : i32
    %c128_i32_25 = arith.constant 128 : i32
    %13 = tpu.memref_slice %arg1[%c0_i32_23, %c0_i32_24, %c128_i32_25] : memref<4x8x256xf32, #tpu.memory_space<any>> -> memref<4x8x128xf32, #tpu.memory_space<any>>
    %14 = tpu.memref_slice %arg2[%c0_i32_19] : memref<1x!tpu.dma_semaphore, #tpu.memory_space<semaphore_mem>> -> memref<1x!tpu.dma_semaphore, #tpu.memory_space<semaphore_mem>>
    %15 = tpu.memref_squeeze %14 : memref<1x!tpu.dma_semaphore, #tpu.memory_space<semaphore_mem>> -> memref<!tpu.dma_semaphore, #tpu.memory_space<semaphore_mem>>
    tpu.wait_dma2 semaphore(%15 : memref<!tpu.dma_semaphore, #tpu.memory_space<semaphore_mem>>) src(%12 : memref<4x8x128xf32, #tpu.memory_space<any>>) dst(%13 : memref<4x8x128xf32, #tpu.memory_space<any>>)
    return
  }
}

</mosaic_0001>

<bundles_post_ra>
// kernel: tpu_custom_call.1
= control target key start
LH: loop header
LB: loop body
LE: loop exit
PB: predicated region body
PF: predicated region fallthrough
CT: control target
= control target key end

     0   :  { %s68_s6 = smov 256   ;;  %s69_s7 = smov 8   ;;  %s96_s0 = inlined_call_operand.hbm [shape: f32[4,8,256], index: 0, kind: input, shape index: {}]   ;;  %s97_s1 = inlined_call_operand.hbm [shape: f32[4,8,256], index: 1, kind: output, shape index: {}]  }
   0x1   :  { %18 = sst [smem:[#allocation4]] %s68_s6  ;;  %s70_s8 = smov [#allocation2]  }
   0x2   :  { %20 = sst [smem:[#allocation4 + $0x1]] %s68_s6  ;;  %s71_s9 = smov [#allocation3]  }
   0x3   :  { %22 = sst [smem:[#allocation4 + $0x2]] %s69_s7  ;;  %s72_s10 = smov 0  }
   0x4   :  { %24 = dma.general %s96_s0, 512, %s97_s1, %s70_s8, %s71_s9, [#allocation4], %s72_s10, 0  }
   0x5   :  { %39 = sst [smem:[#allocation6]] %s68_s6  ;;  %s25_s17 = scalar_lea.hbm %s96_s0, 128 }
   0x6   :  { %41 = sst [smem:[#allocation6 + $0x1]] %s68_s6  ;;  %s26_s20 = scalar_lea.hbm %s97_s1, 128 }
   0x7   :  { %43 = sst [smem:[#allocation6 + $0x2]] %s69_s7  ;;  %s73_s21 = smov [#allocation5]  }
   0x8   :  { %45 = dma.general %s25_s17, 512, %s26_s20, %s70_s8, %s73_s21, [#allocation6], %s72_s10, 0  }
   0x9   :  { %66 = dma.done.wait [#allocation2], 1024 }
   0xa   :  { %67 = vsyncadd [#allocation2], 4294966272 }
   0xb   :  { %53 = vsyncmov [#allocation2] }
   0xe   :  { %s54_s22 = vpop.sfrf %53 }
   0xf   :  { %p59_p0 = scmp.ne.s32.totalorder %s54_s22, 0 }
  0x11   :  { %58 = shalt.err (%p59_p0)  }

</bundles_post_ra>
